<compile_context>
chip_gen: v7x
topology: tpu7x:2x2x1
jax: 0.10.0
libtpu: 0.0.40
codegen_flags: <defaults>
</compile_context>

<pallas_src>
import numpy as np
import jax
import jax.numpy as jnp
from jax.experimental import pallas as pl
from jax.experimental.pallas import tpu as pltpu

LANE = 128
NEG_BIG = -1e30  # padded-action-lane bias -> exp() underflows to 0 in the softmax sum


# ----------------------------- Pallas kernel ------------------------------ #
def pcn_forward_kernel(state_ref, dret_ref, dhor_ref,
                       ws_ref,                 # s_emb weight       [S, P]
                       wcr_ref, wch_ref,       # c_emb weight (scale folded) [R, P], [1, P]
                       w1_ref, w2_ref,         # fc weights         [P, P], [P, P]
                       b_ref,                  # merged biases      [4, P] (bs, bc, b1, b2)
                       out_ref):               # log-probs          [TB, P]
    # s = sigmoid(state @ Ws + bs)
    s = jnp.dot(state_ref[...], ws_ref[...], preferred_element_type=jnp.float32)
    s = jax.nn.sigmoid(s + b_ref[0:1, :])

    # c = sigmoid(dret @ (scale_r*Wc_r) + dhor * (scale_h*Wc_h) + bc)   (no concat needed)
    ce = jnp.dot(dret_ref[...], wcr_ref[...], preferred_element_type=jnp.float32)
    ce = ce + dhor_ref[...] * wch_ref[...] + b_ref[1:2, :]
    ce = jax.nn.sigmoid(ce)

    # fc(s*c) = LogSoftmax(ReLU((s*c) @ W1 + b1) @ W2 + b2)
    h1 = jnp.dot(s * ce, w1_ref[...], preferred_element_type=jnp.float32) + b_ref[2:3, :]
    h1 = jnp.maximum(h1, 0.0)
    logits = jnp.dot(h1, w2_ref[...], preferred_element_type=jnp.float32) + b_ref[3:4, :]

    # numerically stable log-softmax over the (lane-dense, padded) action axis;
    # padded lanes sit at ~-1e30 so they do not perturb max / sum.
    m = jnp.max(logits, axis=-1, keepdims=True)
    z = logits - m
    lse = jnp.log(jnp.sum(jnp.exp(z), axis=-1, keepdims=True))
    out_ref[...] = z - lse


# ------------------------- host-side param prep ---------------------------- #
def _pad_lanes(x, lanes, value=0.0):
    pad = lanes - x.shape[-1]
    if pad <= 0:
        return x.astype(jnp.float32)
    return jnp.pad(x.astype(jnp.float32), ((0, 0), (0, pad)), constant_values=value)


def prepare_params(params, reward_dim):
    """One-time f32 host prep: fold scaling_factor into Wc, pad to lane width, merge biases."""
    H = params["w1"].shape[0]
    A = params["w2"].shape[1]
    P = ((max(H, A) + LANE - 1) // LANE) * LANE

    scale = params["scale"].astype(jnp.float32)              # (1, R+1)
    wc_scaled = scale.T * params["wc"].astype(jnp.float32)    # fold scale into Wc (exact f32)

    return {
        "ws": _pad_lanes(params["ws"], P),                                   # (S, P)
        "wcr": _pad_lanes(wc_scaled[:reward_dim], P),                        # (R, P)
        "wch": _pad_lanes(wc_scaled[reward_dim:], P),                        # (1, P)
        # zero-pad BOTH rows and cols so padded hidden lanes contribute nothing
        "w1": jnp.pad(params["w1"].astype(jnp.float32), ((0, P - H), (0, P - H))),
        "w2": jnp.pad(params["w2"].astype(jnp.float32), ((0, P - H), (0, P - A))),
        "b": jnp.concatenate([
            _pad_lanes(params["bs"], P),
            _pad_lanes(params["bc"], P),
            _pad_lanes(params["b1"], P),
            _pad_lanes(params["b2"], P, value=NEG_BIG),       # mask padded action lanes
        ], axis=0),                                           # (4, P)
        "action_dim": A,
        "padded": P,
    }


# --------------------------------- wrapper ---------------------------------- #
def pcn_forward(state, desired_return, desired_horizon, prepped, *, tile_b=256):
    B, S = state.shape
    R = desired_return.shape[1]
    P = prepped["padded"]
    A = prepped["action_dim"]

    TB = B if B <= tile_b else tile_b            # batch tile; remainder handled by masked writes
    grid = (pl.cdiv(B, TB),)

    def batch_spec(d):
        return pl.BlockSpec((TB, d), lambda i: (i, 0))

    def fixed_spec(shape):
        return pl.BlockSpec(shape, lambda i: (0, 0))   # weights stay resident across the grid

    flops = int(2 * B * (S * P + R * P + P * P + P * P))
    transcendentals = int(B * 3 * P)                   # 2 sigmoids + exp
    bytes_accessed = int(4 * (state.size + desired_return.size + desired_horizon.size
                              + prepped["ws"].size + prepped["wcr"].size + prepped["wch"].size
                              + prepped["w1"].size + prepped["w2"].size + prepped["b"].size
                              + B * P))

    out = pl.pallas_call(
        pcn_forward_kernel,
        out_shape=jax.ShapeDtypeStruct((B, P), jnp.float32),
        grid=grid,
        in_specs=[
            batch_spec(S),            # state
            batch_spec(R),            # desired_return
            batch_spec(1),            # desired_horizon
            fixed_spec((S, P)),       # ws
            fixed_spec((R, P)),       # wcr (scale folded in)
            fixed_spec((1, P)),       # wch (scale folded in)
            fixed_spec((P, P)),       # w1
            fixed_spec((P, P)),       # w2
            fixed_spec((4, P)),       # merged biases
        ],
        out_specs=batch_spec(P),      # lane-dense (128-wide) output store
        compiler_params=pltpu.CompilerParams(dimension_semantics=("parallel",)),
        cost_estimate=pl.CostEstimate(flops=flops, transcendentals=transcendentals,
                                      bytes_accessed=bytes_accessed),
    )(state, desired_return, desired_horizon,
      prepped["ws"], prepped["wcr"], prepped["wch"],
      prepped["w1"], prepped["w2"], prepped["b"])

    return out[:, :A]                 # drop padded action lanes


# --------------------------- pure-JAX reference ---------------------------- #
def pcn_forward_ref(state, desired_return, desired_horizon, params):
    c = jnp.concatenate([desired_return, desired_horizon], axis=-1) * params["scale"]
    s = jax.nn.sigmoid(state @ params["ws"] + params["bs"])
    ce = jax.nn.sigmoid(c @ params["wc"] + params["bc"])
    h1 = jnp.maximum((s * ce) @ params["w1"] + params["b1"], 0.0)
    logits = h1 @ params["w2"] + params["b2"]
    return jax.nn.log_softmax(logits, axis=-1)


# --------------------------------- main ------------------------------------ #
if __name__ == "__main__":
    B = 8
    state_dim = 32
    reward_dim = 2
    hidden_dim = 32
    action_dim = 4

    key = jax.random.PRNGKey(0)
    ks = jax.random.split(key, 12)

    def init(k, shape, scl=0.1):
        return jax.random.normal(k, shape, dtype=jnp.float32) * scl

    # Raw parameters exactly as the PyTorch module holds them (weights as [in, out]).
    params = {
        "scale": jnp.array([[0.1, 0.1, 0.01]], dtype=jnp.float32),   # (1, reward_dim+1)
        "ws": init(ks[0], (state_dim, hidden_dim)),
        "bs": init(ks[1], (1, hidden_dim)),
        "wc": init(ks[2], (reward_dim + 1, hidden_dim)),
        "bc": init(ks[3], (1, hidden_dim)),
        "w1": init(ks[4], (hidden_dim, hidden_dim)),
        "b1": init(ks[5], (1, hidden_dim)),
        "w2": init(ks[6], (hidden_dim, action_dim)),
        "b2": init(ks[7], (1, action_dim)),
    }

    state = jax.random.normal(ks[8], (B, state_dim), dtype=jnp.float32)
    desired_return = jax.random.normal(ks[9], (B, reward_dim), dtype=jnp.float32) * 10.0
    desired_horizon = jax.random.uniform(ks[10], (B, 1), dtype=jnp.float32) * 50.0

    prepped = prepare_params(params, reward_dim)           # one-time host prep

    out = pcn_forward(state, desired_return, desired_horizon, prepped)
    out = jax.block_until_ready(out)

    ref = pcn_forward_ref(state, desired_return, desired_horizon, params)
    np.testing.assert_allclose(np.asarray(out), np.asarray(ref), rtol=1e-5, atol=1e-5)

    print("KERNEL_OK")
</pallas_src>

<mosaic_0001>
module attributes {stable_mosaic.version = 11 : i64} {
  func.func @pcn_forward_kernel(%arg0: i32, %arg1: memref<8x32xf32, #tpu.memory_space<vmem>>, %arg2: memref<8x2xf32, #tpu.memory_space<vmem>>, %arg3: memref<8x1xf32, #tpu.memory_space<vmem>>, %arg4: memref<32x128xf32, #tpu.memory_space<vmem>>, %arg5: memref<2x128xf32, #tpu.memory_space<vmem>>, %arg6: memref<1x128xf32, #tpu.memory_space<vmem>>, %arg7: memref<128x128xf32, #tpu.memory_space<vmem>>, %arg8: memref<128x128xf32, #tpu.memory_space<vmem>>, %arg9: memref<4x128xf32, #tpu.memory_space<vmem>>, %arg10: memref<8x128xf32, #tpu.memory_space<vmem>>) attributes {dimension_semantics = [#tpu.dimension_semantics<parallel>], iteration_bounds = array<i64: 1>, scalar_prefetch = 0 : i64, scratch_operands = 0 : i64, tpu.core_type = #tpu.core_type<tc>, window_params = [{transform_indices = @transform_0, window_bounds = array<i64: 8, 32>}, {transform_indices = @transform_1, window_bounds = array<i64: 8, 2>}, {transform_indices = @transform_2, window_bounds = array<i64: 8, 1>}, {pipeline_mode = #tpu.pipeline_mode<synchronous>, transform_indices = @transform_3, window_bounds = array<i64: 32, 128>}, {pipeline_mode = #tpu.pipeline_mode<synchronous>, transform_indices = @transform_4, window_bounds = array<i64: 2, 128>}, {pipeline_mode = #tpu.pipeline_mode<synchronous>, transform_indices = @transform_5, window_bounds = array<i64: 1, 128>}, {pipeline_mode = #tpu.pipeline_mode<synchronous>, transform_indices = @transform_6, window_bounds = array<i64: 128, 128>}, {pipeline_mode = #tpu.pipeline_mode<synchronous>, transform_indices = @transform_7, window_bounds = array<i64: 128, 128>}, {pipeline_mode = #tpu.pipeline_mode<synchronous>, transform_indices = @transform_8, window_bounds = array<i64: 4, 128>}, {transform_indices = @transform_9, window_bounds = array<i64: 8, 128>}]} {
    %c0 = arith.constant 0 : index
    %c0_0 = arith.constant 0 : index
    %0 = vector.load %arg1[%c0, %c0_0] : memref<8x32xf32, #tpu.memory_space<vmem>>, vector<8x32xf32>
    %c0_1 = arith.constant 0 : index
    %c0_2 = arith.constant 0 : index
    %1 = vector.load %arg4[%c0_1, %c0_2] : memref<32x128xf32, #tpu.memory_space<vmem>>, vector<32x128xf32>
    %cst = arith.constant dense<0.000000e+00> : vector<8x128xf32>
    %2 = tpu.matmul %0, %1, %cst {dimension_numbers = #tpu.dot_dimension_numbers<[1], [0], [0], [1], [0, 0, 1, 1], [], []>} : vector<8x32xf32>, vector<32x128xf32>, vector<8x128xf32> -> vector<8x128xf32>
    %c0_3 = arith.constant 0 : index
    %c0_4 = arith.constant 0 : index
    %3 = vector.load %arg9[%c0_3, %c0_4] : memref<4x128xf32, #tpu.memory_space<vmem>>, vector<1x128xf32>
    %4 = vector.broadcast %3 : vector<1x128xf32> to vector<8x128xf32>
    %5 = arith.addf %2, %4 : vector<8x128xf32>
    %6 = arith.negf %5 : vector<8x128xf32>
    %7 = math.exp %6 : vector<8x128xf32>
    %cst_5 = arith.constant 1.000000e+00 : f32
    %8 = vector.broadcast %cst_5 : f32 to vector<8x128xf32>
    %9 = arith.addf %8, %7 : vector<8x128xf32>
    %10 = arith.divf %8, %9 : vector<8x128xf32>
    %c0_6 = arith.constant 0 : index
    %c0_7 = arith.constant 0 : index
    %11 = vector.load %arg2[%c0_6, %c0_7] : memref<8x2xf32, #tpu.memory_space<vmem>>, vector<8x2xf32>
    %c0_8 = arith.constant 0 : index
    %c0_9 = arith.constant 0 : index
    %12 = vector.load %arg5[%c0_8, %c0_9] : memref<2x128xf32, #tpu.memory_space<vmem>>, vector<2x128xf32>
    %cst_10 = arith.constant dense<0.000000e+00> : vector<8x128xf32>
    %13 = tpu.matmul %11, %12, %cst_10 {dimension_numbers = #tpu.dot_dimension_numbers<[1], [0], [0], [1], [0, 0, 1, 1], [], []>} : vector<8x2xf32>, vector<2x128xf32>, vector<8x128xf32> -> vector<8x128xf32>
    %c0_11 = arith.constant 0 : index
    %c0_12 = arith.constant 0 : index
    %14 = vector.load %arg3[%c0_11, %c0_12] : memref<8x1xf32, #tpu.memory_space<vmem>>, vector<8x1xf32>
    %c0_13 = arith.constant 0 : index
    %c0_14 = arith.constant 0 : index
    %15 = vector.load %arg6[%c0_13, %c0_14] : memref<1x128xf32, #tpu.memory_space<vmem>>, vector<1x128xf32>
    %16 = vector.broadcast %14 : vector<8x1xf32> to vector<8x128xf32>
    %17 = vector.broadcast %15 : vector<1x128xf32> to vector<8x128xf32>
    %18 = arith.mulf %16, %17 : vector<8x128xf32>
    %19 = arith.addf %13, %18 : vector<8x128xf32>
    %c1 = arith.constant 1 : index
    %c0_15 = arith.constant 0 : index
    %20 = vector.load %arg9[%c1, %c0_15] : memref<4x128xf32, #tpu.memory_space<vmem>>, vector<1x128xf32>
    %21 = vector.broadcast %20 : vector<1x128xf32> to vector<8x128xf32>
    %22 = arith.addf %19, %21 : vector<8x128xf32>
    %23 = arith.negf %22 : vector<8x128xf32>
    %24 = math.exp %23 : vector<8x128xf32>
    %cst_16 = arith.constant 1.000000e+00 : f32
    %25 = vector.broadcast %cst_16 : f32 to vector<8x128xf32>
    %26 = arith.addf %25, %24 : vector<8x128xf32>
    %27 = arith.divf %25, %26 : vector<8x128xf32>
    %28 = arith.mulf %10, %27 : vector<8x128xf32>
    %c0_17 = arith.constant 0 : index
    %c0_18 = arith.constant 0 : index
    %29 = vector.load %arg7[%c0_17, %c0_18] : memref<128x128xf32, #tpu.memory_space<vmem>>, vector<128x128xf32>
    %cst_19 = arith.constant dense<0.000000e+00> : vector<8x128xf32>
    %30 = tpu.matmul %28, %29, %cst_19 {dimension_numbers = #tpu.dot_dimension_numbers<[1], [0], [0], [1], [0, 0, 1, 1], [], []>} : vector<8x128xf32>, vector<128x128xf32>, vector<8x128xf32> -> vector<8x128xf32>
    %c2 = arith.constant 2 : index
    %c0_20 = arith.constant 0 : index
    %31 = vector.load %arg9[%c2, %c0_20] : memref<4x128xf32, #tpu.memory_space<vmem>>, vector<1x128xf32>
    %32 = vector.broadcast %31 : vector<1x128xf32> to vector<8x128xf32>
    %33 = arith.addf %30, %32 : vector<8x128xf32>
    %cst_21 = arith.constant 0.000000e+00 : f32
    %34 = vector.broadcast %cst_21 : f32 to vector<8x128xf32>
    %35 = arith.maximumf %33, %34 : vector<8x128xf32>
    %c0_22 = arith.constant 0 : index
    %c0_23 = arith.constant 0 : index
    %36 = vector.load %arg8[%c0_22, %c0_23] : memref<128x128xf32, #tpu.memory_space<vmem>>, vector<128x128xf32>
    %cst_24 = arith.constant dense<0.000000e+00> : vector<8x128xf32>
    %37 = tpu.matmul %35, %36, %cst_24 {dimension_numbers = #tpu.dot_dimension_numbers<[1], [0], [0], [1], [0, 0, 1, 1], [], []>} : vector<8x128xf32>, vector<128x128xf32>, vector<8x128xf32> -> vector<8x128xf32>
    %c3 = arith.constant 3 : index
    %c0_25 = arith.constant 0 : index
    %38 = vector.load %arg9[%c3, %c0_25] : memref<4x128xf32, #tpu.memory_space<vmem>>, vector<1x128xf32>
    %39 = vector.broadcast %38 : vector<1x128xf32> to vector<8x128xf32>
    %40 = arith.addf %37, %39 : vector<8x128xf32>
    %cst_26 = arith.constant dense<0xFF800000> : vector<8xf32>
    %41 = vector.multi_reduction <maximumf>, %40, %cst_26 [1] : vector<8x128xf32> to vector<8xf32>
    %42 = vector.shape_cast %41 : vector<8xf32> to vector<8x1xf32>
    %43 = vector.broadcast %42 : vector<8x1xf32> to vector<8x128xf32>
    %44 = arith.subf %40, %43 : vector<8x128xf32>
    %45 = math.exp %44 : vector<8x128xf32>
    %cst_27 = arith.constant dense<0.000000e+00> : vector<8xf32>
    %46 = vector.multi_reduction <add>, %45, %cst_27 [1] : vector<8x128xf32> to vector<8xf32>
    %47 = vector.shape_cast %46 : vector<8xf32> to vector<8x1xf32>
    %48 = math.log %47 : vector<8x1xf32>
    %49 = vector.broadcast %48 : vector<8x1xf32> to vector<8x128xf32>
    %50 = arith.subf %44, %49 : vector<8x128xf32>
    %c0_28 = arith.constant 0 : index
    %c0_29 = arith.constant 0 : index
    %51 = vector.load %arg10[%c0_28, %c0_29] : memref<8x128xf32, #tpu.memory_space<vmem>>, vector<8x128xf32>
    tpu.vector_store %arg10[%c0_28, %c0_29], %50 {strides = array<i32>} : memref<8x128xf32, #tpu.memory_space<vmem>>, vector<8x128xf32>,
    return
  }
  func.func @transform_0(%arg0: i32) -> (i32, i32) {
    %c0_i32 = arith.constant 0 : i32
    %c0_i32_0 = arith.constant 0 : i32
    return %arg0, %c0_i32 : i32, i32
  }
  func.func @transform_1(%arg0: i32) -> (i32, i32) {
    %c0_i32 = arith.constant 0 : i32
    %c0_i32_0 = arith.constant 0 : i32
    return %arg0, %c0_i32 : i32, i32
  }
  func.func @transform_2(%arg0: i32) -> (i32, i32) {
    %c0_i32 = arith.constant 0 : i32
    %c0_i32_0 = arith.constant 0 : i32
    return %arg0, %c0_i32 : i32, i32
  }
  func.func @transform_3(%arg0: i32) -> (i32, i32) {
    %c0_i32 = arith.constant 0 : i32
    %c0_i32_0 = arith.constant 0 : i32
    %c0_i32_1 = arith.constant 0 : i32
    return %c0_i32, %c0_i32_0 : i32, i32
  }
  func.func @transform_4(%arg0: i32) -> (i32, i32) {
    %c0_i32 = arith.constant 0 : i32
    %c0_i32_0 = arith.constant 0 : i32
    %c0_i32_1 = arith.constant 0 : i32
    return %c0_i32, %c0_i32_0 : i32, i32
  }
  func.func @transform_5(%arg0: i32) -> (i32, i32) {
    %c0_i32 = arith.constant 0 : i32
    %c0_i32_0 = arith.constant 0 : i32
    %c0_i32_1 = arith.constant 0 : i32
    return %c0_i32, %c0_i32_0 : i32, i32
  }
  func.func @transform_6(%arg0: i32) -> (i32, i32) {
    %c0_i32 = arith.constant 0 : i32
    %c0_i32_0 = arith.constant 0 : i32
    %c0_i32_1 = arith.constant 0 : i32
    return %c0_i32, %c0_i32_0 : i32, i32
  }
  func.func @transform_7(%arg0: i32) -> (i32, i32) {
    %c0_i32 = arith.constant 0 : i32
    %c0_i32_0 = arith.constant 0 : i32
    %c0_i32_1 = arith.constant 0 : i32
    return %c0_i32, %c0_i32_0 : i32, i32
  }
  func.func @transform_8(%arg0: i32) -> (i32, i32) {
    %c0_i32 = arith.constant 0 : i32
    %c0_i32_0 = arith.constant 0 : i32
    %c0_i32_1 = arith.constant 0 : i32
    return %c0_i32, %c0_i32_0 : i32, i32
  }
  func.func @transform_9(%arg0: i32) -> (i32, i32) {
    %c0_i32 = arith.constant 0 : i32
    %c0_i32_0 = arith.constant 0 : i32
    return %arg0, %c0_i32 : i32, i32
  }
}

</mosaic_0001>

<bundles_post_ra>
// kernel: tpu_custom_call.1
= control target key start
LH: loop header
LB: loop body
LE: loop exit
PB: predicated region body
PF: predicated region fallthrough
CT: control target
= control target key end

     0   :  { %14 = vsyncpa [#allocation3], 0  ;;  %s962_s0 = inlined_call_operand.vmem [shape: f32[8,32], index: 0, kind: input, shape index: {}]   ;;  %s963_s1 = inlined_call_operand.vmem [shape: f32[8,2], index: 1, kind: input, shape index: {}]   ;;  %s964_s2 = inlined_call_operand.vmem [shape: f32[8,1], index: 2, kind: input, shape index: {}]   ;;  %s965_s3 = inlined_call_operand.hbm [shape: f32[32,128], index: 3, kind: input, shape index: {}]   ;;  %s966_s4 = inlined_call_operand.vmem [shape: f32[2,128], index: 4, kind: input, shape index: {}]   ;;  %s967_s5 = inlined_call_operand.vmem [shape: f32[1,128], index: 5, kind: input, shape index: {}]   ;;  %s968_s6 = inlined_call_operand.hbm [shape: f32[128,128], index: 6, kind: input, shape index: {}]   ;;  %s969_s7 = inlined_call_operand.hbm [shape: f32[128,128], index: 7, kind: input, shape index: {}]   ;;  %s970_s8 = inlined_call_operand.vmem [shape: f32[4,128], index: 8, kind: input, shape index: {}]   ;;  %s971_s9 = inlined_call_operand.hbm [shape: f32[8,128], index: 9, kind: output, shape index: {}]  }
   0x1   :  { %15 = vsyncpa [#allocation6], 0 }
   0x2   :  { %16 = vsyncpa [#allocation4], 0  ;;  %s789_s30 = smov [#allocation5]   ;;  %s790_s11 = smov [#allocation2]  }
   0x3   :  { %s44_s10 = sshll.u32 %s789_s30, 4  ;;  %s28_s12 = sshll.u32 %s790_s11, 4  ;;  %s45_s10 = int_to_ptr.vmem [resolvable:$true] %s44_s10  ;;  %s849_s12 = int_to_ptr.vmem [resolvable:$true] %s28_s12 }
   0x4   :  { %s695_s15 = scalar_lea.hbm %s968_s6, 2048 }
   0x5   :  { %p696_p0 = scmp.ne.s32.totalorder %s968_s6, %s695_s15  ;;  %p699_p1 = scmp.lt.u32.totalorder %s695_s15, %s968_s6 }
   0x7   :  { %p701_p2 = pnand %p699_p1, %p696_p0 }
   0x9   :  { %704 = shalt.err (!%p701_p2)
}
   0xa   :  { %s705_s20 = scalar_lea.vmem %s45_s10, 2048  ;;  %p710_p4 = scmp.lt.s32.totalorder %s45_s10, %s45_s10 }
   0xb   :  { %p706_p3 = scmp.ne.s32.totalorder %s45_s10, %s705_s20  ;;  %p711_p5 = scmp.lt.s32.totalorder %s705_s20, %s705_s20 }
   0xd   :  { %p712_p6 = por %p711_p5, %p710_p4 }
   0xf   :  { %p713_p7 = pnand %p712_p6, %p706_p3 }
  0x11   :  { %716 = shalt.err (!%p713_p7)
}
  0x12   :  { %s791_s21 = smov 128   ;;  %s792_s22 = smov 8  }
  0x13   :  { %50 = dma.hbm_to_vmem [thread:$0]  %s968_s6, 2048, %s45_s10, [#allocation6], %s791_s21, %s791_s21, %s792_s22  }
  0x14   :  { %s717_s27 = scalar_lea.hbm %s965_s3, 512 }
  0x15   :  { %p718_p8 = scmp.ne.s32.totalorder %s965_s3, %s717_s27  ;;  %p721_p9 = scmp.lt.u32.totalorder %s717_s27, %s965_s3 }
  0x17   :  { %p723_p10 = pnand %p721_p9, %p718_p8 }
  0x19   :  { %726 = shalt.err (!%p723_p10)
}
  0x1a   :  { %s727_s13 = scalar_lea.vmem %s849_s12, 512  ;;  %p732_p12 = scmp.lt.s32.totalorder %s849_s12, %s849_s12 }
  0x1b   :  { %p728_p11 = scmp.ne.s32.totalorder %s849_s12, %s727_s13  ;;  %p733_p13 = scmp.lt.s32.totalorder %s727_s13, %s727_s13 }
  0x1d   :  { %p734_p0 = por %p733_p13, %p732_p12 }
  0x1f   :  { %p735_p1 = pnand %p734_p0, %p728_p11 }
  0x21   :  { %738 = shalt.err (!%p735_p1)
}
  0x22   :  { %34 = dma.hbm_to_vmem [thread:$0]  %s965_s3, 512, %s849_s12, [#allocation3], %s791_s21, %s791_s21, %s792_s22  }
  0x23   :  { %s793_s14 = smov [#allocation7]   ;;  %s739_s18 = scalar_lea.hbm %s969_s7, 2048 }
  0x24   :  { %s56_s15 = sshll.u32 %s793_s14, 4  ;;  %p740_p2 = scmp.ne.s32.totalorder %s969_s7, %s739_s18  ;;  %s57_s15 = int_to_ptr.vmem [resolvable:$true] %s56_s15 }
  0x25   :  { %p743_p3 = scmp.lt.u32.totalorder %s739_s18, %s969_s7 }
  0x27   :  { %p745_p4 = pnand %p743_p3, %p740_p2 }
  0x29   :  { %748 = shalt.err (!%p745_p4)
}
  0x2a   :  { %s749_s25 = scalar_lea.vmem %s57_s15, 2048  ;;  %p754_p6 = scmp.lt.s32.totalorder %s57_s15, %s57_s15 }
  0x2b   :  { %p750_p5 = scmp.ne.s32.totalorder %s57_s15, %s749_s25  ;;  %p755_p7 = scmp.lt.s32.totalorder %s749_s25, %s749_s25 }
  0x2d   :  { %p756_p8 = por %p755_p7, %p754_p6 }
  0x2f   :  { %p757_p9 = pnand %p756_p8, %p750_p5 }
  0x31   :  { %760 = shalt.err (!%p757_p9)
}
  0x32   :  { %62 = dma.hbm_to_vmem [thread:$0]  %s969_s7, 2048, %s57_s15, [#allocation6], %s791_s21, %s791_s21, %s792_s22  }
  0x33   :  { %783 = dma.done.wait [#allocation3], 512  }
  0x34   :  { %784 = vsyncadd [#allocation3], 4294966784 }
  0x35   :  { %785 = dma.done.wait [#allocation6], 4096  }
  0x36   :  { %786 = vsyncadd [#allocation6], 4294963200  ;;  %v794_v0 = vmov 0.0|0.0   ;;  %v795_v1 = vmov 0.0   ;;  %vm796_vm0 = vmmov 0   ;;  %v797_v2 = vmov 0  }
  0x37   :  { %618 = vmatprep.subr.bf16.mxu0 %v794_v0  ;;  %543 = vmatprep.subr.mxu1 %v795_v1  ;;  %vm184_vm1 = vcmask 1041408   ;;  %vm180_vm2 = vcmask 15360   ;;  %v75_v3 = vld [vmem:[#allocation2] sm:$0xff]  ;;  %v76_v4 = vld [vmem:[#allocation2 + $0x8] sm:$0xff]  ;;  %v77_v7 = vld [vmem:[#allocation2 + $0x10] sm:$0xff]  ;;  %vm84_vm3 = vcmask 261120  }
  0x38   :  { %545 = vmatprep.mubr.msk.f32.mxu1 %vm796_vm0, %v795_v1  ;;  %540 = vmatprep.mubr.msk.f32.mxu0 %vm796_vm0, %v795_v1  ;;  %v165_v5 = vld [vmem:[%s966_s4] sm:$0x3]  ;;  %v619_v6 = vpack.c.bf16 %v76_v4, %v75_v3  ;;  %v78_v8 = vld [vmem:[#allocation2 + $0x18] sm:$0xff]  ;;  %v272_v14 = vld [vmem:[#allocation5 + $0x8] sm:$0xff]  ;;  %s798_s15 = smov [#allocation8]  }
  0x39   :  { %682 = vset.pattern.permute.xlu0 %v797_v2  ;;  %544 = vmatpush3.msk.msra.mxu1 %vm184_vm1, %v165_v5  ;;  %v164_v9 = vld [vmem:[%s963_s1] sm:$0xff]  ;;  %v622_v11 = vpack.c.bf16 %v78_v8, %v77_v7  ;;  %v273_v16 = vld [vmem:[#allocation5 + $0x10] sm:$0xff]  ;;  %v274_v17 = vld [vmem:[#allocation5 + $0x18] sm:$0xff]  ;;  %s471_s16 = sshll.u32 %s798_s15, 4  ;;  %s472_s16 = int_to_ptr.vmem [resolvable:$true] %s471_s16 }
  0x3a   :  { %546 = vmatmul.mubr.msk.f32.vlgmr.msra.gmra.mrb[0].mxu1 %vm180_vm2, %v164_v9  ;;  %v166_v10 = vld [vmem:[%s964_s2] sm:$0xff]  ;;  %624 = vmatprep.subr.bf16.mxu1 %v794_v0  ;;  %v628_v18 = vpack.c.bf16 %v274_v17, %v273_v16  ;;  %v276_v20 = vld [vmem:[#allocation5 + $0x28] sm:$0xff]  ;;  %v277_v22 = vld [vmem:[#allocation5 + $0x30] sm:$0xff]  ;;  %p766_p11 = scmp.lt.s32.totalorder %s472_s16, %s472_s16 }
  0x3b   :  { %620 = vmatpush3.bf16.msra.mxu0 %v619_v6  ;;  %170 = vperm.xlu0 %682, %v166_v10   ;;  %v74_v12 = vld [vmem:[%s962_s0] sm:$0xff]  ;;  %v278_v23 = vld [vmem:[#allocation5 + $0x38] sm:$0xff]  ;;  %v280_v26 = vld [vmem:[#allocation5 + $0x48] sm:$0xff] }
  0x3c   :  { %621 = vmatprep.subr.bf16.mxu0 %v794_v0  ;;  %580 = vmatprep.mubr.msk.f32.mxu1 %vm796_vm0, %v795_v1  ;;  %v271_v13 = vld [vmem:[#allocation5] sm:$0xff]  ;;  %v634_v24 = vpack.c.bf16 %v278_v23, %v277_v22  ;;  %v281_v28 = vld [vmem:[#allocation5 + $0x50] sm:$0xff]  ;;  %v282_v29 = vld [vmem:[#allocation5 + $0x58] sm:$0xff] }
  0x3d   :  { %v625_v15 = vpack.c.bf16 %v272_v14, %v271_v13  ;;  %v275_v19 = vld [vmem:[#allocation5 + $0x20] sm:$0xff]  ;;  %v640_v30 = vpack.c.bf16 %v282_v29, %v281_v28  ;;  %v284_v32 = vld [vmem:[#allocation5 + $0x68] sm:$0xff]  ;;  %v285_v34 = vld [vmem:[#allocation5 + $0x70] sm:$0xff] }
  0x3e   :  { %v631_v21 = vpack.c.bf16 %v276_v20, %v275_v19  ;;  %v279_v25 = vld [vmem:[#allocation5 + $0x40] sm:$0xff]  ;;  %v286_v35 = vld [vmem:[#allocation5 + $0x78] sm:$0xff]  ;;  %v364_v38 = vld [vmem:[#allocation7 + $0x8] sm:$0xff] }
  0x3f   :  { %623 = vmatpush3.bf16.msra.mxu0 %v622_v11  ;;  %626 = vmatpush3.bf16.msra.mxu1 %v625_v15  ;;  %v637_v27 = vpack.c.bf16 %v280_v26, %v279_v25  ;;  %v283_v31 = vld [vmem:[#allocation5 + $0x60] sm:$0xff]  ;;  %v646_v36 = vpack.c.bf16 %v286_v35, %v285_v34  ;;  %v365_v39 = vld [vmem:[#allocation7 + $0x10] sm:$0xff]  ;;  %v366_v41 = vld [vmem:[#allocation7 + $0x18] sm:$0xff] }
  0x40   :  { %648 = vmatprep.subr.bf16.mxu0 %v794_v0  ;;  %627 = vmatprep.subr.bf16.mxu1 %v794_v0  ;;  %v643_v33 = vpack.c.bf16 %v284_v32, %v283_v31  ;;  %v363_v37 = vld [vmem:[#allocation7] sm:$0xff]  ;;  %v652_v42 = vpack.c.bf16 %v366_v41, %v365_v39  ;;  %v368_v44 = vld [vmem:[#allocation7 + $0x28] sm:$0xff]  ;;  %v369_v46 = vld [vmem:[#allocation7 + $0x30] sm:$0xff] }
  0x41   :  { %v649_v40 = vpack.c.bf16 %v364_v38, %v363_v37  ;;  %v367_v43 = vld [vmem:[#allocation7 + $0x20] sm:$0xff]  ;;  %v370_v47 = vld [vmem:[#allocation7 + $0x38] sm:$0xff]  ;;  %v372_v50 = vld [vmem:[#allocation7 + $0x48] sm:$0xff] }
  0x42   :  { %541 = vmatmul.mubr.msk.f32.vlgmr.msra.gmra.mrb[0].mxu0 %vm84_vm3, %v74_v12  ;;  %v655_v45 = vpack.c.bf16 %v368_v44, %v367_v43  ;;  %v658_v48 = vpack.c.bf16 %v370_v47, %v369_v46  ;;  %v371_v49 = vld [vmem:[#allocation7 + $0x40] sm:$0xff]  ;;  %v373_v52 = vld [vmem:[#allocation7 + $0x50] sm:$0xff]  ;;  %v374_v53 = vld [vmem:[#allocation7 + $0x58] sm:$0xff] }
  0x43   :  { %615 = vmatprep.mubr.msk.f32.mxu0 %vm796_vm0, %v795_v1  ;;  %629 = vmatpush3.bf16.msra.mxu1 %v628_v18  ;;  %v661_v51 = vpack.c.bf16 %v372_v50, %v371_v49  ;;  %v664_v54 = vpack.c.bf16 %v374_v53, %v373_v52  ;;  %v375_v55 = vld [vmem:[#allocation7 + $0x60] sm:$0xff]  ;;  %v376_v56 = vld [vmem:[#allocation7 + $0x68] sm:$0xff]  ;;  %v377_v15 = vld [vmem:[#allocation7 + $0x70] sm:$0xff] }
  0x44   :  { %630 = vmatprep.subr.bf16.mxu1 %v794_v0  ;;  %650 = vmatpush3.bf16.msra.mxu0 %v649_v40  ;;  %v667_v57 = vpack.c.bf16 %v376_v56, %v375_v55  ;;  %v484_v58 = vld [vmem:[%s967_s5] ss:$0 sm:$0xff]  ;;  %v487_v62 = vld [vmem:[%s970_s8 + $0x1] ss:$0 sm:$0xff]  ;;  %v378_v16 = vld [vmem:[#allocation7 + $0x78] sm:$0xff] }
  0x45   :  { %651 = vmatprep.subr.bf16.mxu0 %v794_v0  ;;  %v481_v4 = vld [vmem:[%s970_s8] ss:$0 sm:$0xff]  ;;  %v670_v17 = vpack.c.bf16 %v378_v16, %v377_v15  ;;  %v489_v18 = vld [vmem:[%s970_s8 + $0x2] ss:$0 sm:$0xff]  ;;  %v490_v23 = vld [vmem:[%s970_s8 + $0x3] ss:$0 sm:$0xff] }
  0x46   :  { %s761_s8 = scalar_lea.vmem %s472_s16, 128 }
  0x47   :  { %632 = vmatpush3.bf16.msra.mxu1 %v631_v21  ;;  %p762_p10 = scmp.ne.s32.totalorder %s472_s16, %s761_s8  ;;  %p767_p12 = scmp.lt.s32.totalorder %s761_s8, %s761_s8 }
  0x48   :  { %633 = vmatprep.subr.bf16.mxu1 %v794_v0  ;;  %653 = vmatpush3.bf16.msra.mxu0 %v652_v42 }
  0x49   :  { %654 = vmatprep.subr.bf16.mxu0 %v794_v0  ;;  %p768_p13 = por %p767_p12, %p766_p11 }
  0x4b   :  { %635 = vmatpush3.bf16.msra.mxu1 %v634_v24  ;;  %p769_p0 = pnand %p768_p13, %p762_p10 }
  0x4c   :  { %636 = vmatprep.subr.bf16.mxu1 %v794_v0  ;;  %656 = vmatpush3.bf16.msra.mxu0 %v655_v45 }
  0x4d   :  { %657 = vmatprep.subr.bf16.mxu0 %v794_v0 }
  0x4f   :  { %638 = vmatpush3.bf16.msra.mxu1 %v637_v27 }
  0x50   :  { %639 = vmatprep.subr.bf16.mxu1 %v794_v0  ;;  %659 = vmatpush3.bf16.msra.mxu0 %v658_v48 }
  0x51   :  { %660 = vmatprep.subr.bf16.mxu0 %v794_v0 }
  0x53   :  { %641 = vmatpush3.bf16.msra.mxu1 %v640_v30 }
  0x54   :  { %642 = vmatprep.subr.bf16.mxu1 %v794_v0  ;;  %662 = vmatpush3.bf16.msra.mxu0 %v661_v51 }
  0x55   :  { %663 = vmatprep.subr.bf16.mxu0 %v794_v0 }
  0x57   :  { %644 = vmatpush3.bf16.msra.mxu1 %v643_v33 }
  0x58   :  { %645 = vmatprep.subr.bf16.mxu1 %v794_v0  ;;  %665 = vmatpush3.bf16.msra.mxu0 %v664_v54 }
  0x59   :  { %666 = vmatprep.subr.bf16.mxu0 %v794_v0 }
  0x5b   :  { %647 = vmatpush3.bf16.msra.mxu1 %v646_v36 }
  0x5c   :  { %668 = vmatpush3.bf16.msra.mxu0 %v667_v57 }
  0x5d   :  { %669 = vmatprep.subr.bf16.mxu0 %v794_v0 }
  0x60   :  { %671 = vmatpush3.bf16.msra.mxu0 %v670_v17 }
  0xba   :  { %v171_v59 = vpop.permute.xlu0 %170 }
  0xbb   :  { %v179_v60 = vmul.f32 %v484_v58, %v171_v59 }
 0x10d   :  { %v254_v61 = vpop.f32.mrb[0].mxu1 }
 0x10e   :  { %v255_v63 = vadd.f32 %v254_v61, %v179_v60  ;;  %v547_v1 = vpop.f32.mrb[1].mxu1 }
 0x110   :  { %v263_v2 = vadd.f32 %v487_v62, %v255_v63 }
 0x112   :  { %v488_v3 = vmul.f32 -1.442695, %v263_v2 }
 0x114   :  { %683 = vpow2.f32 %v488_v3 }
 0x115   :  { %v154_v0 = vpop.f32.mrb[0].mxu0 }
 0x116   :  { %v155_v5 = vadd.f32 %v481_v4, %v154_v0  ;;  %v542_v6 = vpop.f32.mrb[1].mxu0 }
 0x118   :  { %v483_v7 = vmul.f32 -1.442695, %v155_v5 }
 0x11a   :  { %685 = vpow2.f32 %v483_v7 }
 0x11e   :  { %v684_v8 = vpop.eup %683 }
 0x11f   :  { %v267_v9 = vadd.f32 1.0, %v684_v8 }
 0x121   :  { %687 = vrcp.f32 %v267_v9 }
 0x124   :  { %v686_v10 = vpop.eup %685 }
 0x125   :  { %v161_v11 = vadd.f32 1.0, %v686_v10 }
 0x127   :  { %689 = vrcp.f32 %v161_v11 }
 0x12b   :  { %v688_v12 = vpop.eup %687 }
 0x131   :  { %v690_v13 = vpop.eup %689 }
 0x132   :  { %v270_v14 = vmul.f32 %v690_v13, %v688_v12 }
 0x134   :  { %581 = vmatmul.mubr.f32.vlgmr.msra.gmra.mrb[2].mxu1 %v270_v14 }
 0x207   :  { %v358_v19 = vpop.f32.mrb[2].mxu1 }
 0x208   :  { %v359_v20 = vadd.f32 %v489_v18, %v358_v19  ;;  %v582_v21 = vpop.f32.mrb[3].mxu1 }
 0x20a   :  { %v362_v22 = vmax.f32 %v359_v20, 0.0 }
 0x20c   :  { %616 = vmatmul.mubr.f32.vlgmr.msra.gmra.mrb[2].mxu0 %v362_v22 }
 0x2df   :  { %v450_v24 = vpop.f32.mrb[2].mxu0 }
 0x2e0   :  { %v451_v25 = vadd.f32 %v490_v23, %v450_v24  ;;  %v617_v26 = vpop.f32.mrb[3].mxu0 }
 0x2e2   :  { %454 = vmax.xlane.f32.xlu0 %v451_v25 }
 0x36f   :  { %v455_v27 = vpop.xlane.xlu0 %454 }
 0x370   :  { %v456_v28 = vsub.f32 %v451_v25, %v455_v27 }
 0x372   :  { %v457_v29 = vmul.f32 1.442695, %v456_v28 }
 0x374   :  { %691 = vpow2.f32 %v457_v29 }
 0x37e   :  { %v692_v30 = vpop.eup %691 }
 0x37f   :  { %459 = vadd.xlane.f32.xlu1 %v692_v30 }
 0x40c   :  { %v460_v31 = vpop.xlane.xlu1 %459 }
 0x40d   :  { %693 = vlog2.f32 %v460_v31 }
 0x417   :  { %v694_v32 = vpop.eup %693 }
 0x418   :  { %v462_v33 = vmul.f32 0.6931472, %v694_v32 }
 0x41a   :  { %v463_v34 = vsub.f32 %v456_v28, %v462_v33 }
 0x41c   :  { %464 = vst [vmem:[#allocation8] sm:$0xff] %v463_v34 }
 0x41d   :  { %772 = shalt.err (!%p769_p0)
}
 0x41e   :  { %s773_s19 = scalar_lea.hbm %s971_s9, 128 }
 0x41f   :  { %p774_p1 = scmp.ne.s32.totalorder %s971_s9, %s773_s19  ;;  %p777_p2 = scmp.lt.u32.totalorder %s773_s19, %s971_s9 }
 0x421   :  { %p779_p3 = pnand %p777_p2, %p774_p1 }
 0x423   :  { %782 = shalt.err (!%p779_p3)
}
 0x424   :  { %474 = dma.vmem_to_hbm [thread:$0]  %s472_s16, 128, %s971_s9, [#allocation4]  }
 0x425   :  { %787 = dma.done.wait [#allocation4], 128  }
 0x426   :  { %788 = vsyncadd [#allocation4], 4294967168 }
 0x427   :  { %478 = vsyncpa [#allocation3], 1 }
 0x428   :  { %479 = vsyncpa [#allocation6], 1 }
 0x429   :  { %480 = vsyncpa [#allocation4], 1 }

</bundles_post_ra>
